<compile_context>
chip_gen: v7x
topology: tpu7x:2x2x1
jax: 0.10.0
libtpu: 0.0.40
codegen_flags: <defaults>
</compile_context>

<pallas_src>
import functools

import jax
import jax.numpy as jnp
from jax.experimental import pallas as pl
from jax.experimental.pallas import tpu as pltpu


def _double_attention_kernel(x_ref, w_ref, b_ref, o_ref, *, c, cg, n_true):
    x = x_ref[...]                                   # (C, Np) f32
    w = w_ref[...]                                   # (3*Cg, C)
    bias = b_ref[...]                                # (3*Cg, 1)
    n_pad = x.shape[-1]

    # One stacked MXU matmul computes convA / convB / convV at once.
    abv = jnp.dot(w, x, preferred_element_type=jnp.float32) + bias   # (3*Cg, Np)
    # Each group starts at a sublane-tile-aligned row offset (Cg % 8 == 0).
    a = abv[0 * cg:0 * cg + c, :]                    # (C, Np)
    b = abv[1 * cg:1 * cg + c, :]
    v = abv[2 * cg:2 * cg + c, :]

    # Mask out padded spatial lanes so they do not enter the softmax sums.
    if n_pad != n_true:
        col = jax.lax.broadcasted_iota(jnp.int32, (c, n_pad), 1)
        pad_mask = col < n_true
        b = jnp.where(pad_mask, b, -jnp.inf)
        v = jnp.where(pad_mask, v, -jnp.inf)

    # Unnormalized softmax numerators; the normalizations are deferred and
    # folded into the small (C, C) descriptor instead of dividing (C, N) slabs.
    b_exp = jnp.exp(b - jnp.max(b, axis=-1, keepdims=True))          # (C, Np)
    v_exp = jnp.exp(v - jnp.max(v, axis=-1, keepdims=True))          # (C, Np)
    s_b = jnp.sum(b_exp, axis=-1, keepdims=True)                     # (C, 1)
    s_v = jnp.sum(v_exp, axis=-1, keepdims=True)                     # (C, 1)

    # gd_un[i, j] = sum_n b_exp[i, n] * a[j, n]  -- NT contraction, no (N, C)
    # transpose is materialized.
    gd_un = jax.lax.dot_general(
        b_exp, a, (((1,), (1,)), ((), ())),
        preferred_element_type=jnp.float32)                          # (C, C)

    # Fold 1/sum(b_exp), the 1/N of the mean, and 1/sum(v_exp) into a per-row
    # scale of the descriptor.  Exact reciprocal on a (C, 1) vector is
    # essentially free and keeps the 1e-5 match with the reference.
    row_scale = pl.reciprocal(s_b * s_v * float(n_true), approx=False)  # (C, 1)
    gd = gd_un * row_scale                                           # (C, C)

    # out[j, n] = sum_i gd[i, j] * v_exp[i, n]  ==  gd.T @ v_exp
    # (transposing the tiny (C, C) matrix is negligible).
    o_ref[...] = jnp.dot(gd.T, v_exp, preferred_element_type=jnp.float32)


def attention_layer_pallas(x, wa, ba, wb, bb, wv, bv):
    """x: (B, C, H, W) float32 (NCHW).  Returns (B, C, H, W)."""
    B, C, H, W = x.shape
    N = H * W
    N_pad = ((N + 127) // 128) * 128          # lane-dense spatial axis
    Cg = ((C + 7) // 8) * 8                   # sublane-aligned group stride

    x_flat = x.reshape(B, C, N).astype(jnp.float32)
    if N_pad != N:
        x_flat = jnp.pad(x_flat, ((0, 0), (0, 0), (0, N_pad - N)))

    # Stack the three 1x1-conv weights/biases, each group padded to Cg rows so
    # in-kernel slices start on sublane-tile boundaries.
    w_stacked = jnp.zeros((3 * Cg, C), jnp.float32)
    w_stacked = (w_stacked.at[0 * Cg:0 * Cg + C].set(wa.astype(jnp.float32))
                          .at[1 * Cg:1 * Cg + C].set(wb.astype(jnp.float32))
                          .at[2 * Cg:2 * Cg + C].set(wv.astype(jnp.float32)))
    b_stacked = jnp.zeros((3 * Cg, 1), jnp.float32)
    b_stacked = (b_stacked.at[0 * Cg:0 * Cg + C, 0].set(ba.astype(jnp.float32))
                          .at[1 * Cg:1 * Cg + C, 0].set(bb.astype(jnp.float32))
                          .at[2 * Cg:2 * Cg + C, 0].set(bv.astype(jnp.float32)))

    # VMEM budget: x/out blocks double-buffered + stacked conv output +
    # b_exp/v_exp temporaries + weights, with 2x headroom.
    slab = C * N_pad * 4
    est = (4 * slab                       # x + out, double-buffered
           + 3 * Cg * N_pad * 4           # abv
           + 4 * slab                     # b_exp / v_exp / fusion temporaries
           + 2 * (3 * Cg * (C + 1)) * 4)  # weights + bias, double-buffered
    vmem_limit = int(min(max(2 * est, 16 * 1024 * 1024), 64 * 1024 * 1024))

    kernel = functools.partial(_double_attention_kernel, c=C, cg=Cg, n_true=N)

    out_flat = pl.pallas_call(
        kernel,
        out_shape=jax.ShapeDtypeStruct((B, C, N_pad), jnp.float32),
        grid_spec=pltpu.PrefetchScalarGridSpec(
            num_scalar_prefetch=0,
            grid=(B,),
            in_specs=[
                pl.BlockSpec((pl.Squeezed(), C, N_pad), lambda i: (i, 0, 0)),  # x
                pl.BlockSpec((3 * Cg, C), lambda i: (0, 0)),                   # W stacked
                pl.BlockSpec((3 * Cg, 1), lambda i: (0, 0)),                   # b stacked
            ],
            out_specs=pl.BlockSpec((pl.Squeezed(), C, N_pad), lambda i: (i, 0, 0)),
        ),
        compiler_params=pltpu.CompilerParams(
            dimension_semantics=("parallel",),
            vmem_limit_bytes=vmem_limit,
        ),
    )(x_flat, w_stacked, b_stacked)

    if N_pad != N:
        out_flat = out_flat[:, :, :N]
    return out_flat.reshape(B, C, H, W)


def attention_layer_ref(x, wa, ba, wb, bb, wv, bv):
    """Pure-JAX reference mirroring the PyTorch forward exactly."""
    B, C, H, W = x.shape
    N = H * W
    xf = x.reshape(B, C, N)
    a = jnp.einsum("oc,bcn->bon", wa, xf) + ba[None, :, None]   # convA
    b = jnp.einsum("oc,bcn->bon", wb, xf) + bb[None, :, None]   # convB
    v = jnp.einsum("oc,bcn->bon", wv, xf) + bv[None, :, None]   # convV
    feature_maps = a[:, None, :, :]                             # (B, 1, C, N)
    atten_map = jax.nn.softmax(b, axis=-1)[:, :, None, :]       # (B, C, 1, N)
    gd = jnp.mean(feature_maps * atten_map, axis=-1)            # (B, C, C)
    atten_vectors = jax.nn.softmax(v, axis=-1)                  # (B, C, N)
    out = jnp.einsum("bin,bij->bjn", atten_vectors, gd)         # (B, C, N)
    return out.reshape(B, C, H, W)


if __name__ == "__main__":
    key = jax.random.PRNGKey(0)

    def make_case(case_key, B, C, H, W):
        k = jax.random.split(case_key, 7)
        x = jax.random.normal(k[0], (B, C, H, W), dtype=jnp.float32)
        wa = jax.random.normal(k[1], (C, C), dtype=jnp.float32) * 0.5
        wb = jax.random.normal(k[2], (C, C), dtype=jnp.float32) * 0.5
        wv = jax.random.normal(k[3], (C, C), dtype=jnp.float32) * 0.5
        ba = jax.random.normal(k[4], (C,), dtype=jnp.float32) * 0.1
        bb = jax.random.normal(k[5], (C,), dtype=jnp.float32) * 0.1
        bv = jax.random.normal(k[6], (C,), dtype=jnp.float32) * 0.1
        return x, wa, ba, wb, bb, wv, bv

    k1, k2 = jax.random.split(key)

    # Case 1: lane-aligned spatial size (H*W = 256).
    args = make_case(k1, 2, 4, 16, 16)
    out = jax.block_until_ready(attention_layer_pallas(*args))
    ref = attention_layer_ref(*args)
    assert out.shape == (2, 4, 16, 16)
    assert jnp.allclose(out, ref, atol=1e-5, rtol=1e-5), "mismatch vs reference (case 1)"

    # Case 2: ragged spatial size (H*W = 196) exercises the pad-to-128 + mask path.
    args = make_case(k2, 1, 4, 14, 14)
    out = jax.block_until_ready(attention_layer_pallas(*args))
    ref = attention_layer_ref(*args)
    assert out.shape == (1, 4, 14, 14)
    assert jnp.allclose(out, ref, atol=1e-5, rtol=1e-5), "mismatch vs reference (case 2)"

    print("KERNEL_OK")
</pallas_src>

<mosaic_0001>
module attributes {stable_mosaic.version = 11 : i64} {
  func.func @_double_attention_kernel(%arg0: i32, %arg1: memref<1x4x256xf32, #tpu.memory_space<vmem>>, %arg2: memref<24x4xf32, #tpu.memory_space<vmem>>, %arg3: memref<24x1xf32, #tpu.memory_space<vmem>>, %arg4: memref<1x4x256xf32, #tpu.memory_space<vmem>>) attributes {dimension_semantics = [#tpu.dimension_semantics<parallel>], iteration_bounds = array<i64: 2>, scalar_prefetch = 0 : i64, scratch_operands = 0 : i64, tpu.core_type = #tpu.core_type<tc>, window_params = [{transform_indices = @transform_0, window_bounds = array<i64: 1, 4, 256>}, {pipeline_mode = #tpu.pipeline_mode<synchronous>, transform_indices = @transform_1, window_bounds = array<i64: 24, 4>}, {pipeline_mode = #tpu.pipeline_mode<synchronous>, transform_indices = @transform_2, window_bounds = array<i64: 24, 1>}, {transform_indices = @transform_3, window_bounds = array<i64: 1, 4, 256>}]} {
    %c0 = arith.constant 0 : index
    %c0_0 = arith.constant 0 : index
    %c0_1 = arith.constant 0 : index
    %0 = vector.load %arg1[%c0, %c0_0, %c0_1] : memref<1x4x256xf32, #tpu.memory_space<vmem>>, vector<1x4x256xf32>
    %1 = vector.shape_cast %0 : vector<1x4x256xf32> to vector<4x256xf32>
    %c0_2 = arith.constant 0 : index
    %c0_3 = arith.constant 0 : index
    %2 = vector.load %arg2[%c0_2, %c0_3] : memref<24x4xf32, #tpu.memory_space<vmem>>, vector<24x4xf32>
    %c0_4 = arith.constant 0 : index
    %c0_5 = arith.constant 0 : index
    %3 = vector.load %arg3[%c0_4, %c0_5] : memref<24x1xf32, #tpu.memory_space<vmem>>, vector<24x1xf32>
    %cst = arith.constant dense<0.000000e+00> : vector<24x256xf32>
    %4 = tpu.matmul %2, %1, %cst {dimension_numbers = #tpu.dot_dimension_numbers<[1], [0], [0], [1], [0, 0, 1, 1], [], []>} : vector<24x4xf32>, vector<4x256xf32>, vector<24x256xf32> -> vector<24x256xf32>
    %5 = vector.broadcast %3 : vector<24x1xf32> to vector<24x256xf32>
    %6 = arith.addf %4, %5 : vector<24x256xf32>
    %7 = vector.extract_strided_slice %6 {offsets = [0, 0], sizes = [4, 256], strides = [1, 1]} : vector<24x256xf32> to vector<4x256xf32>
    %8 = vector.extract_strided_slice %6 {offsets = [8, 0], sizes = [4, 256], strides = [1, 1]} : vector<24x256xf32> to vector<4x256xf32>
    %9 = vector.extract_strided_slice %6 {offsets = [16, 0], sizes = [4, 256], strides = [1, 1]} : vector<24x256xf32> to vector<4x256xf32>
    %cst_6 = arith.constant dense<0xFF800000> : vector<4xf32>
    %10 = vector.multi_reduction <maximumf>, %8, %cst_6 [1] : vector<4x256xf32> to vector<4xf32>
    %11 = vector.shape_cast %10 : vector<4xf32> to vector<4x1xf32>
    %12 = vector.broadcast %11 : vector<4x1xf32> to vector<4x256xf32>
    %13 = arith.subf %8, %12 : vector<4x256xf32>
    %14 = math.exp %13 : vector<4x256xf32>
    %cst_7 = arith.constant dense<0xFF800000> : vector<4xf32>
    %15 = vector.multi_reduction <maximumf>, %9, %cst_7 [1] : vector<4x256xf32> to vector<4xf32>
    %16 = vector.shape_cast %15 : vector<4xf32> to vector<4x1xf32>
    %17 = vector.broadcast %16 : vector<4x1xf32> to vector<4x256xf32>
    %18 = arith.subf %9, %17 : vector<4x256xf32>
    %19 = math.exp %18 : vector<4x256xf32>
    %cst_8 = arith.constant dense<0.000000e+00> : vector<4xf32>
    %20 = vector.multi_reduction <add>, %14, %cst_8 [1] : vector<4x256xf32> to vector<4xf32>
    %21 = vector.shape_cast %20 : vector<4xf32> to vector<4x1xf32>
    %cst_9 = arith.constant dense<0.000000e+00> : vector<4xf32>
    %22 = vector.multi_reduction <add>, %19, %cst_9 [1] : vector<4x256xf32> to vector<4xf32>
    %23 = vector.shape_cast %22 : vector<4xf32> to vector<4x1xf32>
    %cst_10 = arith.constant dense<0.000000e+00> : vector<4x4xf32>
    %24 = tpu.matmul %14, %7, %cst_10 {dimension_numbers = #tpu.dot_dimension_numbers<[1], [1], [0], [0], [0, 0, 1, 0], [], []>} : vector<4x256xf32>, vector<4x256xf32>, vector<4x4xf32> -> vector<4x4xf32>
    %25 = arith.mulf %21, %23 : vector<4x1xf32>
    %cst_11 = arith.constant 2.560000e+02 : f32
    %26 = vector.broadcast %cst_11 : f32 to vector<4x1xf32>
    %27 = arith.mulf %25, %26 : vector<4x1xf32>
    %28 = tpu.reciprocal %27 : vector<4x1xf32> -> vector<4x1xf32>
    %29 = vector.broadcast %28 : vector<4x1xf32> to vector<4x4xf32>
    %30 = arith.mulf %24, %29 : vector<4x4xf32>
    %31 = tpu.transpose %30, [1, 0] : vector<4x4xf32> -> vector<4x4xf32>
    %cst_12 = arith.constant dense<0.000000e+00> : vector<4x256xf32>
    %32 = tpu.matmul %31, %19, %cst_12 {dimension_numbers = #tpu.dot_dimension_numbers<[1], [0], [0], [1], [0, 0, 1, 1], [], []>} : vector<4x4xf32>, vector<4x256xf32>, vector<4x256xf32> -> vector<4x256xf32>
    %c0_13 = arith.constant 0 : index
    %c0_14 = arith.constant 0 : index
    %c0_15 = arith.constant 0 : index
    %33 = vector.load %arg4[%c0_13, %c0_14, %c0_15] : memref<1x4x256xf32, #tpu.memory_space<vmem>>, vector<1x4x256xf32>
    %34 = vector.shape_cast %33 : vector<1x4x256xf32> to vector<4x256xf32>
    %35 = vector.shape_cast %32 : vector<4x256xf32> to vector<1x4x256xf32>
    tpu.vector_store %arg4[%c0_13, %c0_14, %c0_15], %35 {strides = array<i32>} : memref<1x4x256xf32, #tpu.memory_space<vmem>>, vector<1x4x256xf32>,
    return
  }
  func.func @transform_0(%arg0: i32) -> (i32, i32, i32) {
    %c0_i32 = arith.constant 0 : i32
    %c0_i32_0 = arith.constant 0 : i32
    %c0_i32_1 = arith.constant 0 : i32
    return %arg0, %c0_i32, %c0_i32_0 : i32, i32, i32
  }
  func.func @transform_1(%arg0: i32) -> (i32, i32) {
    %c0_i32 = arith.constant 0 : i32
    %c0_i32_0 = arith.constant 0 : i32
    %c0_i32_1 = arith.constant 0 : i32
    return %c0_i32, %c0_i32_0 : i32, i32
  }
  func.func @transform_2(%arg0: i32) -> (i32, i32) {
    %c0_i32 = arith.constant 0 : i32
    %c0_i32_0 = arith.constant 0 : i32
    %c0_i32_1 = arith.constant 0 : i32
    return %c0_i32, %c0_i32_0 : i32, i32
  }
  func.func @transform_3(%arg0: i32) -> (i32, i32, i32) {
    %c0_i32 = arith.constant 0 : i32
    %c0_i32_0 = arith.constant 0 : i32
    %c0_i32_1 = arith.constant 0 : i32
    return %arg0, %c0_i32, %c0_i32_0 : i32, i32, i32
  }
}

</mosaic_0001>

<bundles_post_ra>
// kernel: tpu_custom_call.1
= control target key start
LH: loop header
LB: loop body
LE: loop exit
PB: predicated region body
PF: predicated region fallthrough
CT: control target
= control target key end

     0   :  { %8 = vsyncpa [#allocation3], 0  ;;  %s889_s0 = inlined_call_operand.vmem [shape: f32[2,4,256], index: 0, kind: input, shape index: {}]   ;;  %s890_s1 = inlined_call_operand.vmem [shape: f32[24,4], index: 1, kind: input, shape index: {}]   ;;  %s891_s2 = inlined_call_operand.vmem [shape: f32[24,1], index: 2, kind: input, shape index: {}]   ;;  %s892_s3 = inlined_call_operand.hbm [shape: f32[2,4,256], index: 3, kind: output, shape index: {}]  }
   0x1   :  { %10 = vsyncpa [#allocation3 + $0x1], 0  ;;  %s751_s12 = smov 0   ;;  %s753_s13 = smov 0  }
   0x2   :  { %s755_s14 = smov 0   ;;  %s757_s15 = smov 0  }
   0x3 LB: > { %s772_s16 = sadd.s32 4294967295, %s726_s15   ;;  %s588_s17 = sadd.s32 4294967294, %s726_s15   ;;  %s726_s15 = sphi %s757_s15, %s898_s15   ;;  %s722_s14 = sphi %s755_s14, %s897_s14   ;;  %s718_s13 = sphi %s753_s13, %s896_s13   ;;  %s714_s12 = sphi %s751_s12, %s895_s12  }
   0x4   : > { %s776_s18 = sadd.s32 1, %s726_s15   ;;  %s91_s19 = sadd.s32 1, %s722_s14 }
   0x5   : > { %s88_s20 = ssub.s32 %s726_s15, %s776_s18  ;;  %p101_p0 = scmp.ne.s32.totalorder %s722_s14, %s718_s13 }
   0x6   : > { %p89_p1 = scmp.eq.s32.totalorder %s88_s20, 0  ;;  %p102_p2 = scmp.eq.s32.totalorder %s772_s16, 1 }
   0x7   : > { %p107_p3 = scmp.ne.s32.totalorder %s718_s13, %s714_s12  ;;  %p108_p4 = scmp.eq.s32.totalorder %s588_s17, 1 }
   0x8   : > { %s787_s21 = scalar_select %p89_p1, %s722_s14, %s91_s19  }
   0x9   : > { %p789_p5 = por %p102_p2, %p101_p0  ;;  %p793_p6 = por %p108_p4, %p107_p3 }
   0xa   : > { %p591_p7 = scmp.ge.s32.totalorder %s726_s15, 1  ;;  %p140_p8 = scmp.lt.s32.totalorder %s726_s15, 3 }
   0xc   : > { %p141_p9 = pnand %p591_p7, %p140_p8 }
   0xd   : > { %p164_p10 = scmp.lt.s32.totalorder (!%p141_p9), %s772_s16, 1  ;;  %v728_v0 = vmov (!%p141_p9), 0.0   ;;  %v173_v1 = vld [vmem:[%s891_s2] sm:$0xff] (!%p141_p9)  ;;  %v174_v2 = vld [vmem:[%s891_s2 + $0x8] sm:$0xff] (!%p141_p9)  ;;  %v729_v3 = vmov (!%p141_p9), 0   ;;  %v175_v4 = vld [vmem:[%s891_s2 + $0x10] sm:$0xff] (!%p141_p9) }
   0xe   : > { %144 = sbr.rel (%p141_p9) target bundleno = 983 (0x3d7), region = 32  ;;  %272 = vmatprep.mubr.f32.mxu0 (!%p141_p9), %v728_v0  ;;  %652 = vset.pattern.permute.xlu1 (!%p141_p9), %v729_v3  ;;  %vm203_vm0 = vcmask (!%p141_p9), 1043456   ;;  %v170_v7 = vld [vmem:[%s890_s1] sm:$0xff] (!%p141_p9)  ;;  %vm193_vm1 = vcmask (!%p141_p9), 31744   ;;  %v171_v8 = vld [vmem:[%s890_s1 + $0x8] sm:$0xff] (!%p141_p9)  ;;  %v172_v9 = vld [vmem:[%s890_s1 + $0x10] sm:$0xff] (!%p141_p9) }
   0xf   : > { %651 = vset.pattern.permute.xlu0 (!%p141_p9), %v729_v3  ;;  %178 = vperm.xlu1 (!%p141_p9), %652, %v173_v1   ;;  %s161_s20 = sand.u32 (!%p141_p9), 1, %s718_s13   ;;  %s609_s25 = sshll.u32 (!%p141_p9), %s772_s16, 7 }
  0x10   : > { %183 = vperm.xlu0 (!%p141_p9), %651, %v174_v2   ;;  %s592_s24 = sshll.u32 (!%p141_p9), %s161_s20, 3  ;;  %s847_s30 = scalar_lea.hbm (!%p141_p9), %s892_s3, %s609_s25 }
  0x11   : > { %s163_s26 = scalar_lea.vmem (!%p141_p9), [#allocation2], %s592_s24  ;;  %s515_s4 = scalar_lea.sflag (!%p141_p9), [#allocation3], %s161_s20 }
  0x12   : > { %s529_s27 = sshll.u32 (!%p141_p9), %s163_s26, 4  ;;  %s849_s27 = int_to_ptr.vmem [resolvable:$true] %s529_s27 }
  0x13   : > { %188 = vperm.xlu1 (!%p141_p9), %652, %v175_v4   ;;  %s664_s5 = scalar_lea.vmem (!%p141_p9), %s849_s27, 128 }
  0x14   : > { %p665_p11 = scmp.ne.s32.totalorder (!%p141_p9), %s849_s27, %s664_s5 }
  0x15   : > { %s165_s28 = scalar_select %p164_p10, %s772_s16, 1 }
  0x16   : > { %p666_p12 = pnand %p665_p11, %p789_p5  ;;  %s730_s16 = smov [#allocation2]  }
  0x17   : > { %s608_s29 = sshll.u32 %s165_s28, 3  ;;  %s668_s6 = sshll.u32 %s730_s16, 4  ;;  %s669_s6 = int_to_ptr.vmem [resolvable:$false] %s668_s6 }
  0x18   : > { %s168_s7 = scalar_lea.vmem %s889_s0, %s608_s29  ;;  %p667_p13 = pneg %p666_p12 }
  0x19   : > { %v169_v5 = vld [vmem:[%s168_s7] sm:$0xff]  ;;  %s670_s7 = scalar_lea.vmem %s669_s6, 256  ;;  %p671_p0 = scmp.lt.s32.totalorder %s849_s27, %s669_s6 }
  0x1a   : > { %v192_v6 = vcombine.high %v169_v5, %v169_v5  ;;  %p672_p1 = scmp.lt.s32.totalorder %s670_s7, %s664_s5 }
  0x1c   : > { %595 = vmatprep.subr.msk.mxu0 %vm203_vm0, %v192_v6  ;;  %p673_p2 = por %p672_p1, %p671_p0 }
  0x1d   : > { %596 = vmatpush1.msk.msra.mxu0 %vm203_vm0, %v169_v5 }
  0x1e   : > { %597 = vmatmul.mubr.msk.f32.vlgmr.msra.gmra.mrb[0].mxu0 %vm193_vm1, %v170_v7  ;;  %p674_p3 = pnand %p673_p2, %p667_p13 }
  0x1f   : > { %278 = vmatprep.mubr.f32.mxu0 %v728_v0 }
  0x22   : > { %598 = vmatmul.mubr.msk.f32.gmra.mrb[2].mxu0 %vm193_vm1, %v171_v8 }
  0x23   : > { %284 = vmatprep.mubr.f32.mxu0 %v728_v0 }
  0x26   : > { %599 = vmatmul.mubr.msk.f32.gmra.mrb[4].mxu0 %vm193_vm1, %v172_v9 }
  0x8e   : > { %v179_v10 = vpop.permute.xlu1 %178 }
  0x8f   : > { %v184_v13 = vpop.permute.xlu0 %183 }
  0x92   : > { %v189_v20 = vpop.permute.xlu1 %188 }
  0xf1   : > { %v274_v11 = vpop.f32.mrb[0].mxu0 }
  0xf2   : > { %v276_v12 = vpop.f32.mrb[1].mxu0  ;;  %v275_v15 = vadd.f32 %v274_v11, %v179_v10 }
  0xf3   : > { %v277_v14 = vadd.f32 %v276_v12, %v179_v10 }
  0xf5   : > { %v280_v16 = vpop.f32.mrb[2].mxu0  ;;  %323 = vmatprep.subr.mxu1 %v277_v14 }
  0xf6   : > { %v281_v17 = vadd.f32 %v280_v16, %v184_v13  ;;  %v282_v18 = vpop.f32.mrb[3].mxu0  ;;  %324 = vmatpush1.xpose.msra.mxu1 %v275_v15 }
  0xf7   : > { %v283_v19 = vadd.f32 %v282_v18, %v184_v13 }
  0xf8   : > { %v291_v21 = vsel %vm203_vm0, %v281_v17, -inf }
  0xf9   : > { %v286_v22 = vpop.f32.mrb[4].mxu0  ;;  %v292_v23 = vsel %vm203_vm0, %v283_v19, -inf }
  0xfa   : > { %v287_v24 = vadd.f32 %v286_v22, %v189_v20  ;;  %v288_v25 = vpop.f32.mrb[5].mxu0  ;;  %v293_v26 = vmax.f32 %v291_v21, %v292_v23 }
  0xfb   : > { %v289_v27 = vadd.f32 %v288_v25, %v189_v20 }
  0xfc   : > { %294 = vmax.xlane.f32.xlu0 %v293_v26  ;;  %v302_v28 = vsel %vm203_vm0, %v287_v24, -inf }
  0xfd   : > { %v303_v29 = vsel %vm203_vm0, %v289_v27, -inf }
  0xfe   : > { %v304_v30 = vmax.f32 %v302_v28, %v303_v29 }
 0x100   : > { %305 = vmax.xlane.f32.xlu1 %v304_v30 }
 0x189   : > { %v295_v31 = vpop.xlane.xlu0 %294 }
 0x18a   : > { %v296_v32 = vsub.f32 %v281_v17, %v295_v31  ;;  %v297_v33 = vsub.f32 %v283_v19, %v295_v31 }
 0x18c   : > { %v298_v34 = vmul.f32 1.442695, %v296_v32  ;;  %v300_v35 = vmul.f32 1.442695, %v297_v33 }
 0x18d   : > { %v306_v36 = vpop.xlane.xlu1 %305 }
 0x18e   : > { %654 = vpow2.f32 %v298_v34  ;;  %v307_v37 = vsub.f32 %v287_v24, %v306_v36  ;;  %v308_v38 = vsub.f32 %v289_v27, %v306_v36 }
 0x18f   : > { %656 = vpow2.f32 %v300_v35 }
 0x190   : > { %v309_v39 = vmul.f32 1.442695, %v307_v37  ;;  %v311_v40 = vmul.f32 1.442695, %v308_v38 }
 0x192   : > { %658 = vpow2.f32 %v309_v39 }
 0x193   : > { %660 = vpow2.f32 %v311_v40 }
 0x198   : > { %v655_v41 = vpop.eup %654 }
 0x199   : > { %v657_v42 = vpop.eup %656  ;;  %v313_v43 = vsel %vm203_vm0, %v655_v41, 0.0 }
 0x19a   : > { %387 = vmatprep.mubr.f32.mxu1 %v657_v42  ;;  %v314_v44 = vsel %vm203_vm0, %v657_v42, 0.0 }
 0x19b   : > { %388 = vmatmul.mubr.f32.vlgmr.msra.gmra.mrb[0].mxu1 %v655_v41  ;;  %v315_v45 = vadd.f32 %v314_v44, %v313_v43 }
 0x19c   : > { %v659_v46 = vpop.eup %658  ;;  %502 = vmatprep.mubr.f32.mxu1 %v728_v0 }
 0x19d   : > { %v661_v47 = vpop.eup %660  ;;  %316 = vadd.xlane.f32.xlu0 %v315_v45  ;;  %v318_v48 = vsel %vm203_vm0, %v659_v46, 0.0 }
 0x19e   : > { %600 = vmatprep.subr.msk.mxu1 %vm203_vm0, %v661_v47  ;;  %v319_v49 = vsel %vm203_vm0, %v661_v47, 0.0 }
 0x19f   : > { %601 = vmatpush1.msk.msra.mxu1 %vm203_vm0, %v659_v46  ;;  %v320_v50 = vadd.f32 %v319_v49, %v318_v48 }
 0x1a1   : > { %321 = vadd.xlane.f32.xlu0 %v320_v50 }
 0x22a   : > { %v317_v51 = vpop.xlane.xlu0 %316 }
 0x22e   : > { %v322_v52 = vpop.xlane.xlu0 %321 }
 0x22f   : > { %v393_v53 = vmul.f32 %v322_v52, %v317_v51 }
 0x231   : > { %v394_v54 = vmul.f32 256.0, %v393_v53 }
 0x233   : > { %662 = vrcp.f32 %v394_v54 }
 0x23d   : > { %v663_v55 = vpop.eup %662 }
 0x26e   : > { %v389_v56 = vpop.f32.mrb[0].mxu1 }
 0x26f   : > { %v396_v57 = vmul.f32 %v663_v55, %v389_v56  ;;  %v391_v58 = vpop.f32.mrb[1].mxu1 }
 0x271   : > { %397 = vxpose.xlu0.b32.start.end [1/1] (short) (narrow) %v396_v57, 8 }
 0x2f1   : > { %v413_v59 = vpop.trf.xlu0 }
 0x2f2   : > { %602 = vmatmul.mubr.msk.f32.vlgmr.msra.gmra.mrb[2].mxu1 %vm193_vm1, %v413_v59 }
 0x3c5   : > { %v504_v60 = vpop.f32.mrb[2].mxu1 }
 0x3c6   : > { %v506_v61 = vpop.f32.mrb[3].mxu1 }
 0x3c7   : > { %v511_v62 = vcombine.low %v504_v60, %v506_v61 }
 0x3c9   : > { %513 = vst [vmem:[%s163_s26] sm:$0xff] %v511_v62 }
 0x3ca   : > { %677 = shalt.err (!%p674_p3)
}
 0x3cb   : > { %s678_s8 = scalar_lea.hbm %s847_s30, 128  ;;  %s682_s11 = scalar_lea.hbm %s892_s3, 256 }
 0x3cc   : > { %p679_p4 = scmp.ne.s32.totalorder %s847_s30, %s678_s8  ;;  %p683_p9 = scmp.lt.u32.totalorder %s847_s30, %s892_s3 }
 0x3cd   : > { %p684_p10 = scmp.lt.u32.totalorder %s682_s11, %s678_s8  ;;  %p686_p12 = scmp.lt.u32.totalorder %s678_s8, %s847_s30 }
 0x3ce   : > { %p680_p7 = pnand %p679_p4, %p789_p5 }
 0x3cf   : > { %p685_p11 = por %p684_p10, %p683_p9 }
 0x3d0   : > { %p681_p8 = pneg %p680_p7 }
 0x3d1   : > { %p687_p13 = por %p686_p12, %p685_p11 }
 0x3d3   : > { %p688_p0 = pnand %p687_p13, %p681_p8 }
 0x3d5   : > { %691 = shalt.err (!%p688_p0)
}
 0x3d6   : > { %610 = dma.vmem_to_hbm [thread:$0]  (%p789_p5), %s849_s27, 128, %s847_s30, %s515_s4  }
 0x3d7 PF: > { %p616_p1 = scmp.ge.s32.totalorder %s726_s15, 2  ;;  %s541_s20 = sand.u32 1, %s714_s12  }
 0x3d8   : > { %s542_s24 = scalar_lea.sflag [#allocation3], %s541_s20 }
 0x3d9   : > { %p613_p2 = pnand %p616_p1, %p793_p6 }
 0x3db   : > { %709 = dma.done.wait (!%p613_p2), %s542_s24, 128  }
 0x3dc   : > { %711 = vsyncadd (!%p613_p2), %s542_s24, 4294967168  ;;  %p13_p3 = scmp.ge.s32.totalorder %s776_s18, 4   ;;  %s895_s12 = smov %s718_s13 }
 0x3dd   : > { %s896_s13 = smov %s722_s14  ;;  %s897_s14 = smov %s787_s21 }
 0x3de   : > { %s898_s15 = smov %s776_s18  ;;  %15 = sbr.rel (!%p13_p3) target bundleno = 3 (0x3), region = 67 }
 0x3e5   :  { %547 = vsyncpa [#allocation3], 1 }
 0x3e6   :  { %549 = vsyncpa [#allocation3 + $0x1], 1 }

</bundles_post_ra>
